<compile_context>
chip_gen: v7x
topology: tpu7x:2x2x1
jax: 0.10.0
libtpu: 0.0.40
codegen_flags: <defaults>
</compile_context>

<pallas_src>
import jax
import jax.numpy as jnp
from jax.experimental import pallas as pl
from jax.experimental.pallas import tpu as pltpu

# ----------------------------- configuration --------------------------------
D_IN = 48          # LSTM input size (observation dim)
HIDDEN = 32        # LSTM hidden size
NUM_LAYERS = 2     # stacked LSTM layers
ACTOR_HIDDEN = (64, 32)
NUM_ACTIONS = 12
LANE = 128         # TPU lane width; also 4*HIDDEN (gate width)
GATES = 4 * HIDDEN
assert GATES == LANE
assert HIDDEN + D_IN <= LANE


def _ceil8(n):
    return (n + 7) // 8 * 8


# ------------------- packed parameter slab row offsets ----------------------
# Every segment starts on a multiple of 8 rows (sublane tile boundary).
OFF_W0 = 0                       # (128,128) fused layer-0 weight:
                                 #   rows  0:32  = W_hh0^T (h0 at lanes 0:32)
                                 #   rows 32:80  = W_ih0^T (x  at lanes 32:80)
                                 #   rows 80:128 = 0
OFF_B0 = OFF_W0 + LANE           # 128  (1,128) b_ih0 + b_hh0
OFF_WIH1 = OFF_B0 + 8            # 136  (32,128) W_ih1^T
OFF_WHH1 = OFF_WIH1 + HIDDEN     # 168  (32,128) W_hh1^T
OFF_B1 = OFF_WHH1 + HIDDEN       # 200  (1,128) b_ih1 + b_hh1
OFF_WA0 = OFF_B1 + 8             # 208  (32,128) actor L0, cols 0:64 used
OFF_BA0 = OFF_WA0 + HIDDEN       # 240
OFF_WA1 = OFF_BA0 + 8            # 248  (64,128) actor L1, cols 0:32 used
OFF_BA1 = OFF_WA1 + ACTOR_HIDDEN[0]   # 312
OFF_WA2 = OFF_BA1 + 8            # 320  (32,128) actor L2, cols 0:12 used
OFF_BA2 = OFF_WA2 + ACTOR_HIDDEN[1]   # 352
N_ROWS = _ceil8(OFF_BA2 + 8)     # 360


def _elu(x):
    # NOTE: jnp.expm1 would be marginally more accurate near 0 at identical EUP
    # cost; exp(x)-1 kept for guaranteed Mosaic lowering.
    return jnp.where(x > 0, x, jnp.exp(x) - 1.0)


# ------------------------------- kernel -------------------------------------
# hc scratch / init / final-state tile layout, all at lane offset 0:
#   row 0: h_layer0 (lanes 0:32)    row 2: c_layer0 (lanes 0:32)
#   row 1: h_layer1 (lanes 0:32)    row 3: c_layer1 (lanes 0:32)
def policy_lstm_kernel(x_seq_ref, params_ref, init_ref,
                       act_ref, state_ref, hc_ref):
    H = HIDDEN
    t = pl.program_id(0)

    @pl.when(t == 0)
    def _():
        hc_ref[...] = init_ref[...]
        act_ref[...] = jnp.zeros_like(act_ref)   # clear pad rows once

    hc = hc_ref[...]                              # (8,128) recurrent state
    x_row = x_seq_ref[pl.ds(t, 1), :]             # (1,128): x_t at lanes 32:80

    # ----- LSTM layer 0: one fused MXU push -----
    # h0 already occupies lanes 0:32 of its scratch row, x occupies 32:80 of
    # x_row -> xh0 is a plain VPU add (no concat / cross-lane movement).
    xh0 = x_row + hc[0:1, :]
    g0 = (jnp.dot(xh0, params_ref[OFF_W0:OFF_W0 + LANE, :],
                  preferred_element_type=jnp.float32)
          + params_ref[OFF_B0:OFF_B0 + 1, :])                 # (1,128)
    sg0 = jax.nn.sigmoid(g0)                                  # full-vreg EUP
    tg0 = jnp.tanh(g0)
    # PyTorch gate order i,f,g,o along lanes.
    c0_new = sg0[:, H:2 * H] * hc[2:3, 0:H] + sg0[:, 0:H] * tg0[:, 2 * H:3 * H]
    h0_new = sg0[:, 3 * H:4 * H] * jnp.tanh(c0_new)           # (1,32)

    # ----- LSTM layer 1: two K=32 pushes (W_hh1 push is layer-0 independent) -----
    g1 = (jnp.dot(h0_new, params_ref[OFF_WIH1:OFF_WIH1 + H, :],
                  preferred_element_type=jnp.float32)
          + jnp.dot(hc[1:2, 0:H], params_ref[OFF_WHH1:OFF_WHH1 + H, :],
                    preferred_element_type=jnp.float32)
          + params_ref[OFF_B1:OFF_B1 + 1, :])                 # (1,128)
    sg1 = jax.nn.sigmoid(g1)
    tg1 = jnp.tanh(g1)
    c1_new = sg1[:, H:2 * H] * hc[3:4, 0:H] + sg1[:, 0:H] * tg1[:, 2 * H:3 * H]
    h1_new = sg1[:, 3 * H:4 * H] * jnp.tanh(c1_new)           # (1,32)

    # ----- update recurrent state in VMEM scratch (no HBM round-trip) -----
    hc_ref[0:1, 0:H] = h0_new
    hc_ref[1:2, 0:H] = h1_new
    hc_ref[2:3, 0:H] = c0_new
    hc_ref[3:4, 0:H] = c1_new

    # ----- actor MLP: Linear -> ELU -> Linear -> ELU -> Linear -----
    # Output lanes are zero-padded to 128 (unused weight cols are 0), so the
    # per-step action store is one unmasked lane-dense 128-wide row store.
    a = _elu(jnp.dot(h1_new, params_ref[OFF_WA0:OFF_WA0 + H, :],
                     preferred_element_type=jnp.float32)
             + params_ref[OFF_BA0:OFF_BA0 + 1, :])            # nonzero lanes 0:64
    a = _elu(jnp.dot(a[:, 0:ACTOR_HIDDEN[0]],
                     params_ref[OFF_WA1:OFF_WA1 + ACTOR_HIDDEN[0], :],
                     preferred_element_type=jnp.float32)
             + params_ref[OFF_BA1:OFF_BA1 + 1, :])            # nonzero lanes 0:32
    act = (jnp.dot(a[:, 0:ACTOR_HIDDEN[1]],
                   params_ref[OFF_WA2:OFF_WA2 + ACTOR_HIDDEN[1], :],
                   preferred_element_type=jnp.float32)
           + params_ref[OFF_BA2:OFF_BA2 + 1, :])              # nonzero lanes 0:12
    act_ref[pl.ds(t, 1), :] = act

    # write the final recurrent state back exactly once, on the last step
    @pl.when(t == pl.num_programs(0) - 1)
    def _():
        state_ref[...] = hc_ref[...]


# ------------------------------- params -------------------------------------
def make_params(key):
    """Deterministic synthetic parameters in PyTorch layout, then packed.

    Returns:
      slab:  (N_ROWS, 128) f32 packed parameter slab for the kernel.
      lstm:  list of (W_ih^T, W_hh^T, b_ih+b_hh[None]) for the pure-JAX reference.
      actor: list of (W^T, b[None]) for the pure-JAX reference.
    """
    keys = jax.random.split(key, 16)
    it = iter(keys)

    lstm = []
    in_dim = D_IN
    for _ in range(NUM_LAYERS):
        w_ih = 0.1 * jax.random.normal(next(it), (GATES, in_dim), jnp.float32)
        w_hh = 0.1 * jax.random.normal(next(it), (GATES, HIDDEN), jnp.float32)
        b_ih = 0.1 * jax.random.normal(next(it), (GATES,), jnp.float32)
        b_hh = 0.1 * jax.random.normal(next(it), (GATES,), jnp.float32)
        lstm.append((w_ih.T, w_hh.T, (b_ih + b_hh)[None, :]))
        in_dim = HIDDEN

    actor = []
    dims = (HIDDEN,) + ACTOR_HIDDEN + (NUM_ACTIONS,)
    for d_in, d_out in zip(dims[:-1], dims[1:]):
        w = 0.1 * jax.random.normal(next(it), (d_out, d_in), jnp.float32)
        b = 0.1 * jax.random.normal(next(it), (d_out,), jnp.float32)
        actor.append((w.T, b[None, :]))

    # ---- pack everything into one lane-dense slab (done once, off the hot path) ----
    slab = jnp.zeros((N_ROWS, LANE), jnp.float32)
    (wih0, whh0, b0), (wih1, whh1, b1) = lstm
    slab = slab.at[OFF_W0:OFF_W0 + HIDDEN, :].set(whh0)                     # rows 0:32
    slab = slab.at[OFF_W0 + HIDDEN:OFF_W0 + HIDDEN + D_IN, :].set(wih0)     # rows 32:80
    slab = slab.at[OFF_B0, :].set(b0[0])
    slab = slab.at[OFF_WIH1:OFF_WIH1 + HIDDEN, :].set(wih1)
    slab = slab.at[OFF_WHH1:OFF_WHH1 + HIDDEN, :].set(whh1)
    slab = slab.at[OFF_B1, :].set(b1[0])

    (wa0, ba0), (wa1, ba1), (wa2, ba2) = actor
    slab = slab.at[OFF_WA0:OFF_WA0 + HIDDEN, 0:ACTOR_HIDDEN[0]].set(wa0)
    slab = slab.at[OFF_BA0, 0:ACTOR_HIDDEN[0]].set(ba0[0])
    slab = slab.at[OFF_WA1:OFF_WA1 + ACTOR_HIDDEN[0], 0:ACTOR_HIDDEN[1]].set(wa1)
    slab = slab.at[OFF_BA1, 0:ACTOR_HIDDEN[1]].set(ba1[0])
    slab = slab.at[OFF_WA2:OFF_WA2 + ACTOR_HIDDEN[1], 0:NUM_ACTIONS].set(wa2)
    slab = slab.at[OFF_BA2, 0:NUM_ACTIONS].set(ba2[0])
    return slab, lstm, actor


# ------------------------------- wrappers ------------------------------------
@jax.jit
def policy_rollout(x_seq, hidden_state, cell_state, param_slab):
    """Run T sequential calls of the torch forward() inside one kernel.

    x_seq: (T, D_IN); hidden/cell state: (NUM_LAYERS, 1, HIDDEN) (torch layout).
    Returns (actions (T, NUM_ACTIONS), new_hidden, new_cell)."""
    T = x_seq.shape[0]
    T_pad = _ceil8(T)

    # Observation sequence, x_t pre-placed at lanes 32:80 (layer-0 xh layout).
    xs = jnp.zeros((T_pad, LANE), jnp.float32)
    xs = xs.at[:T, HIDDEN:HIDDEN + D_IN].set(x_seq.astype(jnp.float32))

    # Initial recurrent state in the kernel's scratch layout.
    h = hidden_state[:, 0, :]
    c = cell_state[:, 0, :]
    init = jnp.zeros((8, LANE), jnp.float32)
    init = init.at[0, 0:HIDDEN].set(h[0])
    init = init.at[1, 0:HIDDEN].set(h[1])
    init = init.at[2, 0:HIDDEN].set(c[0])
    init = init.at[3, 0:HIDDEN].set(c[1])

    const2 = lambda t: (0, 0)   # constant block index -> DMA once, VMEM-resident
    acts, state = pl.pallas_call(
        policy_lstm_kernel,
        out_shape=(jax.ShapeDtypeStruct((T_pad, LANE), jnp.float32),
                   jax.ShapeDtypeStruct((8, LANE), jnp.float32)),
        grid_spec=pltpu.PrefetchScalarGridSpec(
            num_scalar_prefetch=0,
            grid=(T,),
            in_specs=[
                pl.BlockSpec((T_pad, LANE), const2),   # observation sequence
                pl.BlockSpec((N_ROWS, LANE), const2),  # parameter slab
                pl.BlockSpec((8, LANE), const2),       # initial h/c
            ],
            out_specs=[
                pl.BlockSpec((T_pad, LANE), const2),   # per-step actions
                pl.BlockSpec((8, LANE), const2),       # final h/c
            ],
            scratch_shapes=[pltpu.VMEM((8, LANE), jnp.float32)],  # resident h/c
        ),
        compiler_params=pltpu.CompilerParams(
            dimension_semantics=("arbitrary",)),       # sequential recurrence
    )(xs, param_slab, init)

    actions = acts[:T, :NUM_ACTIONS]
    h_new = jnp.stack([state[0, :HIDDEN], state[1, :HIDDEN]])[:, None, :]
    c_new = jnp.stack([state[2, :HIDDEN], state[3, :HIDDEN]])[:, None, :]
    return actions, h_new, c_new


def policy_forward(x, hidden_state, cell_state, param_slab):
    """Exact torch forward() equivalent: one step, x (1, D_IN)."""
    return policy_rollout(x, hidden_state, cell_state, param_slab)


# ----------------------------- pure-JAX reference ----------------------------
def reference_step(x, h, c, lstm_params, actor_params):
    H = HIDDEN
    inp = x
    hs, cs = [], []
    for l, (wih, whh, b) in enumerate(lstm_params):
        gates = inp @ wih + h[l:l + 1] @ whh + b
        i_g = jax.nn.sigmoid(gates[:, 0:H])
        f_g = jax.nn.sigmoid(gates[:, H:2 * H])
        g_g = jnp.tanh(gates[:, 2 * H:3 * H])
        o_g = jax.nn.sigmoid(gates[:, 3 * H:4 * H])
        c_new = f_g * c[l:l + 1] + i_g * g_g
        h_new = o_g * jnp.tanh(c_new)
        hs.append(h_new)
        cs.append(c_new)
        inp = h_new
    a = inp
    for idx, (w, b) in enumerate(actor_params):
        a = a @ w + b
        if idx < len(actor_params) - 1:
            a = _elu(a)
    return a, jnp.concatenate(hs, 0), jnp.concatenate(cs, 0)


def reference_rollout(x_seq, hidden_state, cell_state, lstm_params, actor_params):
    h = hidden_state[:, 0, :]
    c = cell_state[:, 0, :]
    acts = []
    for t in range(x_seq.shape[0]):
        a, h, c = reference_step(x_seq[t:t + 1], h, c, lstm_params, actor_params)
        acts.append(a)
    return jnp.concatenate(acts, 0), h[:, None, :], c[:, None, :]


# ---------------------------------- main -------------------------------------
if __name__ == "__main__":
    key = jax.random.PRNGKey(0)
    k_x, k_p = jax.random.split(key)

    param_slab, lstm_params, actor_params = make_params(k_p)

    T = 8
    x_seq = jax.random.normal(k_x, (T, D_IN), jnp.float32)
    hidden_state = jnp.zeros((NUM_LAYERS, 1, HIDDEN), jnp.float32)  # torch buffers
    cell_state = jnp.zeros((NUM_LAYERS, 1, HIDDEN), jnp.float32)

    # multi-step rollout: time loop hoisted into the kernel (grid over T)
    acts, h1, c1 = policy_rollout(x_seq, hidden_state, cell_state, param_slab)
    jax.block_until_ready((acts, h1, c1))

    r_acts, rh, rc = reference_rollout(x_seq, hidden_state, cell_state,
                                       lstm_params, actor_params)
    assert jnp.allclose(acts, r_acts, atol=1e-4), "rollout action mismatch"
    assert jnp.allclose(h1, rh, atol=1e-4), "rollout hidden state mismatch"
    assert jnp.allclose(c1, rc, atol=1e-4), "rollout cell state mismatch"

    # single-step forward() (torch-equivalent), continuing from the rollout state
    act2, h2, c2 = policy_forward(x_seq[:1], h1, c1, param_slab)
    jax.block_until_ready((act2, h2, c2))
    ra2, rh2, rc2 = reference_rollout(x_seq[:1], rh, rc, lstm_params, actor_params)
    assert jnp.allclose(act2, ra2, atol=1e-4), "step action mismatch"
    assert jnp.allclose(h2, rh2, atol=1e-4), "step hidden state mismatch"
    assert jnp.allclose(c2, rc2, atol=1e-4), "step cell state mismatch"

    print("KERNEL_OK")
</pallas_src>

<mosaic_0001>
module attributes {stable_mosaic.version = 11 : i64} {
  func.func @policy_lstm_kernel(%arg0: i32, %arg1: memref<8x128xf32, #tpu.memory_space<vmem>>, %arg2: memref<360x128xf32, #tpu.memory_space<vmem>>, %arg3: memref<8x128xf32, #tpu.memory_space<vmem>>, %arg4: memref<8x128xf32, #tpu.memory_space<vmem>>, %arg5: memref<8x128xf32, #tpu.memory_space<vmem>>, %arg6: memref<8x128xf32, #tpu.memory_space<vmem>>) attributes {dimension_semantics = [#tpu.dimension_semantics<arbitrary>], iteration_bounds = array<i64: 8>, scalar_prefetch = 0 : i64, scratch_operands = 1 : i64, tpu.core_type = #tpu.core_type<tc>, window_params = [{pipeline_mode = #tpu.pipeline_mode<synchronous>, transform_indices = @transform_0, window_bounds = array<i64: 8, 128>}, {pipeline_mode = #tpu.pipeline_mode<synchronous>, transform_indices = @transform_1, window_bounds = array<i64: 360, 128>}, {pipeline_mode = #tpu.pipeline_mode<synchronous>, transform_indices = @transform_2, window_bounds = array<i64: 8, 128>}, {pipeline_mode = #tpu.pipeline_mode<synchronous>, transform_indices = @transform_3, window_bounds = array<i64: 8, 128>}, {pipeline_mode = #tpu.pipeline_mode<synchronous>, transform_indices = @transform_4, window_bounds = array<i64: 8, 128>}]} {
    %c0_i32 = arith.constant 0 : i32
    %0 = arith.cmpi eq, %arg0, %c0_i32 : i32
    %1 = arith.extui %0 : i1 to i32
    %c0_i32_0 = arith.constant 0 : i32
    %2 = arith.cmpi ne, %1, %c0_i32_0 : i32
    scf.if %2 {
      %c0_33 = arith.constant 0 : index
      %c0_34 = arith.constant 0 : index
      %87 = vector.load %arg3[%c0_33, %c0_34] : memref<8x128xf32, #tpu.memory_space<vmem>>, vector<8x128xf32>
      %c0_35 = arith.constant 0 : index
      %c0_36 = arith.constant 0 : index
      %88 = vector.load %arg6[%c0_35, %c0_36] : memref<8x128xf32, #tpu.memory_space<vmem>>, vector<8x128xf32>
      tpu.vector_store %arg6[%c0_35, %c0_36], %87 {strides = array<i32>} : memref<8x128xf32, #tpu.memory_space<vmem>>, vector<8x128xf32>,
      %cst_37 = arith.constant 0.000000e+00 : f32
      %89 = vector.broadcast %cst_37 : f32 to vector<8x128xf32>
      %c0_38 = arith.constant 0 : index
      %c0_39 = arith.constant 0 : index
      %90 = vector.load %arg4[%c0_38, %c0_39] : memref<8x128xf32, #tpu.memory_space<vmem>>, vector<8x128xf32>
      tpu.vector_store %arg4[%c0_38, %c0_39], %89 {strides = array<i32>} : memref<8x128xf32, #tpu.memory_space<vmem>>, vector<8x128xf32>,
    } else {
    }
    %c0 = arith.constant 0 : index
    %c0_1 = arith.constant 0 : index
    %3 = vector.load %arg6[%c0, %c0_1] : memref<8x128xf32, #tpu.memory_space<vmem>>, vector<8x128xf32>
    %4 = arith.index_cast %arg0 : i32 to index
    %c0_2 = arith.constant 0 : index
    %5 = vector.load %arg1[%4, %c0_2] : memref<8x128xf32, #tpu.memory_space<vmem>>, vector<1x128xf32>
    %6 = vector.extract_strided_slice %3 {offsets = [0, 0], sizes = [1, 128], strides = [1, 1]} : vector<8x128xf32> to vector<1x128xf32>
    %7 = arith.addf %5, %6 : vector<1x128xf32>
    %c0_3 = arith.constant 0 : index
    %c0_4 = arith.constant 0 : index
    %8 = vector.load %arg2[%c0_3, %c0_4] : memref<360x128xf32, #tpu.memory_space<vmem>>, vector<128x128xf32>
    %cst = arith.constant dense<0.000000e+00> : vector<1x128xf32>
    %9 = tpu.matmul %7, %8, %cst {dimension_numbers = #tpu.dot_dimension_numbers<[1], [0], [0], [1], [0, 0, 1, 1], [], []>} : vector<1x128xf32>, vector<128x128xf32>, vector<1x128xf32> -> vector<1x128xf32>
    %c128 = arith.constant 128 : index
    %c0_5 = arith.constant 0 : index
    %10 = vector.load %arg2[%c128, %c0_5] : memref<360x128xf32, #tpu.memory_space<vmem>>, vector<1x128xf32>
    %11 = arith.addf %9, %10 : vector<1x128xf32>
    %12 = arith.negf %11 : vector<1x128xf32>
    %13 = math.exp %12 : vector<1x128xf32>
    %cst_6 = arith.constant 1.000000e+00 : f32
    %14 = vector.broadcast %cst_6 : f32 to vector<1x128xf32>
    %15 = arith.addf %14, %13 : vector<1x128xf32>
    %16 = arith.divf %14, %15 : vector<1x128xf32>
    %17 = math.tanh %11 : vector<1x128xf32>
    %18 = vector.extract_strided_slice %16 {offsets = [0, 32], sizes = [1, 32], strides = [1, 1]} : vector<1x128xf32> to vector<1x32xf32>
    %19 = vector.extract_strided_slice %3 {offsets = [2, 0], sizes = [1, 32], strides = [1, 1]} : vector<8x128xf32> to vector<1x32xf32>
    %20 = arith.mulf %18, %19 : vector<1x32xf32>
    %21 = vector.extract_strided_slice %16 {offsets = [0, 0], sizes = [1, 32], strides = [1, 1]} : vector<1x128xf32> to vector<1x32xf32>
    %22 = vector.extract_strided_slice %17 {offsets = [0, 64], sizes = [1, 32], strides = [1, 1]} : vector<1x128xf32> to vector<1x32xf32>
    %23 = arith.mulf %21, %22 : vector<1x32xf32>
    %24 = arith.addf %20, %23 : vector<1x32xf32>
    %25 = vector.extract_strided_slice %16 {offsets = [0, 96], sizes = [1, 32], strides = [1, 1]} : vector<1x128xf32> to vector<1x32xf32>
    %26 = math.tanh %24 : vector<1x32xf32>
    %27 = arith.mulf %25, %26 : vector<1x32xf32>
    %c136 = arith.constant 136 : index
    %c0_7 = arith.constant 0 : index
    %28 = vector.load %arg2[%c136, %c0_7] : memref<360x128xf32, #tpu.memory_space<vmem>>, vector<32x128xf32>
    %cst_8 = arith.constant dense<0.000000e+00> : vector<1x128xf32>
    %29 = tpu.matmul %27, %28, %cst_8 {dimension_numbers = #tpu.dot_dimension_numbers<[1], [0], [0], [1], [0, 0, 1, 1], [], []>} : vector<1x32xf32>, vector<32x128xf32>, vector<1x128xf32> -> vector<1x128xf32>
    %30 = vector.extract_strided_slice %3 {offsets = [1, 0], sizes = [1, 32], strides = [1, 1]} : vector<8x128xf32> to vector<1x32xf32>
    %c168 = arith.constant 168 : index
    %c0_9 = arith.constant 0 : index
    %31 = vector.load %arg2[%c168, %c0_9] : memref<360x128xf32, #tpu.memory_space<vmem>>, vector<32x128xf32>
    %cst_10 = arith.constant dense<0.000000e+00> : vector<1x128xf32>
    %32 = tpu.matmul %30, %31, %cst_10 {dimension_numbers = #tpu.dot_dimension_numbers<[1], [0], [0], [1], [0, 0, 1, 1], [], []>} : vector<1x32xf32>, vector<32x128xf32>, vector<1x128xf32> -> vector<1x128xf32>
    %33 = arith.addf %29, %32 : vector<1x128xf32>
    %c200 = arith.constant 200 : index
    %c0_11 = arith.constant 0 : index
    %34 = vector.load %arg2[%c200, %c0_11] : memref<360x128xf32, #tpu.memory_space<vmem>>, vector<1x128xf32>
    %35 = arith.addf %33, %34 : vector<1x128xf32>
    %36 = arith.negf %35 : vector<1x128xf32>
    %37 = math.exp %36 : vector<1x128xf32>
    %cst_12 = arith.constant 1.000000e+00 : f32
    %38 = vector.broadcast %cst_12 : f32 to vector<1x128xf32>
    %39 = arith.addf %38, %37 : vector<1x128xf32>
    %40 = arith.divf %38, %39 : vector<1x128xf32>
    %41 = math.tanh %35 : vector<1x128xf32>
    %42 = vector.extract_strided_slice %40 {offsets = [0, 32], sizes = [1, 32], strides = [1, 1]} : vector<1x128xf32> to vector<1x32xf32>
    %43 = vector.extract_strided_slice %3 {offsets = [3, 0], sizes = [1, 32], strides = [1, 1]} : vector<8x128xf32> to vector<1x32xf32>
    %44 = arith.mulf %42, %43 : vector<1x32xf32>
    %45 = vector.extract_strided_slice %40 {offsets = [0, 0], sizes = [1, 32], strides = [1, 1]} : vector<1x128xf32> to vector<1x32xf32>
    %46 = vector.extract_strided_slice %41 {offsets = [0, 64], sizes = [1, 32], strides = [1, 1]} : vector<1x128xf32> to vector<1x32xf32>
    %47 = arith.mulf %45, %46 : vector<1x32xf32>
    %48 = arith.addf %44, %47 : vector<1x32xf32>
    %49 = vector.extract_strided_slice %40 {offsets = [0, 96], sizes = [1, 32], strides = [1, 1]} : vector<1x128xf32> to vector<1x32xf32>
    %50 = math.tanh %48 : vector<1x32xf32>
    %51 = arith.mulf %49, %50 : vector<1x32xf32>
    %c0_13 = arith.constant 0 : index
    %c0_14 = arith.constant 0 : index
    %52 = vector.load %arg6[%c0_13, %c0_14] : memref<8x128xf32, #tpu.memory_space<vmem>>, vector<1x32xf32>
    tpu.vector_store %arg6[%c0_13, %c0_14], %27 {strides = array<i32>} : memref<8x128xf32, #tpu.memory_space<vmem>>, vector<1x32xf32>,
    %c1 = arith.constant 1 : index
    %c0_15 = arith.constant 0 : index
    %53 = vector.load %arg6[%c1, %c0_15] : memref<8x128xf32, #tpu.memory_space<vmem>>, vector<1x32xf32>
    tpu.vector_store %arg6[%c1, %c0_15], %51 {strides = array<i32>} : memref<8x128xf32, #tpu.memory_space<vmem>>, vector<1x32xf32>,
    %c2 = arith.constant 2 : index
    %c0_16 = arith.constant 0 : index
    %54 = vector.load %arg6[%c2, %c0_16] : memref<8x128xf32, #tpu.memory_space<vmem>>, vector<1x32xf32>
    tpu.vector_store %arg6[%c2, %c0_16], %24 {strides = array<i32>} : memref<8x128xf32, #tpu.memory_space<vmem>>, vector<1x32xf32>,
    %c3 = arith.constant 3 : index
    %c0_17 = arith.constant 0 : index
    %55 = vector.load %arg6[%c3, %c0_17] : memref<8x128xf32, #tpu.memory_space<vmem>>, vector<1x32xf32>
    tpu.vector_store %arg6[%c3, %c0_17], %48 {strides = array<i32>} : memref<8x128xf32, #tpu.memory_space<vmem>>, vector<1x32xf32>,
    %c208 = arith.constant 208 : index
    %c0_18 = arith.constant 0 : index
    %56 = vector.load %arg2[%c208, %c0_18] : memref<360x128xf32, #tpu.memory_space<vmem>>, vector<32x128xf32>
    %cst_19 = arith.constant dense<0.000000e+00> : vector<1x128xf32>
    %57 = tpu.matmul %51, %56, %cst_19 {dimension_numbers = #tpu.dot_dimension_numbers<[1], [0], [0], [1], [0, 0, 1, 1], [], []>} : vector<1x32xf32>, vector<32x128xf32>, vector<1x128xf32> -> vector<1x128xf32>
    %c240 = arith.constant 240 : index
    %c0_20 = arith.constant 0 : index
    %58 = vector.load %arg2[%c240, %c0_20] : memref<360x128xf32, #tpu.memory_space<vmem>>, vector<1x128xf32>
    %59 = arith.addf %57, %58 : vector<1x128xf32>
    %cst_21 = arith.constant 0.000000e+00 : f32
    %60 = vector.broadcast %cst_21 : f32 to vector<1x128xf32>
    %61 = arith.cmpf ogt, %59, %60 : vector<1x128xf32>
    %62 = math.exp %59 : vector<1x128xf32>
    %cst_22 = arith.constant 1.000000e+00 : f32
    %63 = vector.broadcast %cst_22 : f32 to vector<1x128xf32>
    %64 = arith.subf %62, %63 : vector<1x128xf32>
    %65 = arith.select %61, %59, %64 : vector<1x128xi1>, vector<1x128xf32>
    %66 = vector.extract_strided_slice %65 {offsets = [0, 0], sizes = [1, 64], strides = [1, 1]} : vector<1x128xf32> to vector<1x64xf32>
    %c248 = arith.constant 248 : index
    %c0_23 = arith.constant 0 : index
    %67 = vector.load %arg2[%c248, %c0_23] : memref<360x128xf32, #tpu.memory_space<vmem>>, vector<64x128xf32>
    %cst_24 = arith.constant dense<0.000000e+00> : vector<1x128xf32>
    %68 = tpu.matmul %66, %67, %cst_24 {dimension_numbers = #tpu.dot_dimension_numbers<[1], [0], [0], [1], [0, 0, 1, 1], [], []>} : vector<1x64xf32>, vector<64x128xf32>, vector<1x128xf32> -> vector<1x128xf32>
    %c312 = arith.constant 312 : index
    %c0_25 = arith.constant 0 : index
    %69 = vector.load %arg2[%c312, %c0_25] : memref<360x128xf32, #tpu.memory_space<vmem>>, vector<1x128xf32>
    %70 = arith.addf %68, %69 : vector<1x128xf32>
    %cst_26 = arith.constant 0.000000e+00 : f32
    %71 = vector.broadcast %cst_26 : f32 to vector<1x128xf32>
    %72 = arith.cmpf ogt, %70, %71 : vector<1x128xf32>
    %73 = math.exp %70 : vector<1x128xf32>
    %cst_27 = arith.constant 1.000000e+00 : f32
    %74 = vector.broadcast %cst_27 : f32 to vector<1x128xf32>
    %75 = arith.subf %73, %74 : vector<1x128xf32>
    %76 = arith.select %72, %70, %75 : vector<1x128xi1>, vector<1x128xf32>
    %77 = vector.extract_strided_slice %76 {offsets = [0, 0], sizes = [1, 32], strides = [1, 1]} : vector<1x128xf32> to vector<1x32xf32>
    %c320 = arith.constant 320 : index
    %c0_28 = arith.constant 0 : index
    %78 = vector.load %arg2[%c320, %c0_28] : memref<360x128xf32, #tpu.memory_space<vmem>>, vector<32x128xf32>
    %cst_29 = arith.constant dense<0.000000e+00> : vector<1x128xf32>
    %79 = tpu.matmul %77, %78, %cst_29 {dimension_numbers = #tpu.dot_dimension_numbers<[1], [0], [0], [1], [0, 0, 1, 1], [], []>} : vector<1x32xf32>, vector<32x128xf32>, vector<1x128xf32> -> vector<1x128xf32>
    %c352 = arith.constant 352 : index
    %c0_30 = arith.constant 0 : index
    %80 = vector.load %arg2[%c352, %c0_30] : memref<360x128xf32, #tpu.memory_space<vmem>>, vector<1x128xf32>
    %81 = arith.addf %79, %80 : vector<1x128xf32>
    %82 = arith.index_cast %arg0 : i32 to index
    %c0_31 = arith.constant 0 : index
    %83 = vector.load %arg4[%82, %c0_31] : memref<8x128xf32, #tpu.memory_space<vmem>>, vector<1x128xf32>
    tpu.vector_store %arg4[%82, %c0_31], %81 {strides = array<i32>} : memref<8x128xf32, #tpu.memory_space<vmem>>, vector<1x128xf32>,
    %c7_i32 = arith.constant 7 : i32
    %84 = arith.cmpi eq, %arg0, %c7_i32 : i32
    %85 = arith.extui %84 : i1 to i32
    %c0_i32_32 = arith.constant 0 : i32
    %86 = arith.cmpi ne, %85, %c0_i32_32 : i32
    scf.if %86 {
      %c0_33 = arith.constant 0 : index
      %c0_34 = arith.constant 0 : index
      %87 = vector.load %arg6[%c0_33, %c0_34] : memref<8x128xf32, #tpu.memory_space<vmem>>, vector<8x128xf32>
      %c0_35 = arith.constant 0 : index
      %c0_36 = arith.constant 0 : index
      %88 = vector.load %arg5[%c0_35, %c0_36] : memref<8x128xf32, #tpu.memory_space<vmem>>, vector<8x128xf32>
      tpu.vector_store %arg5[%c0_35, %c0_36], %87 {strides = array<i32>} : memref<8x128xf32, #tpu.memory_space<vmem>>, vector<8x128xf32>,
    } else {
    }
    return
  }
  func.func @transform_0(%arg0: i32) -> (i32, i32) {
    %c0_i32 = arith.constant 0 : i32
    %c0_i32_0 = arith.constant 0 : i32
    %c0_i32_1 = arith.constant 0 : i32
    return %c0_i32, %c0_i32_0 : i32, i32
  }
  func.func @transform_1(%arg0: i32) -> (i32, i32) {
    %c0_i32 = arith.constant 0 : i32
    %c0_i32_0 = arith.constant 0 : i32
    %c0_i32_1 = arith.constant 0 : i32
    return %c0_i32, %c0_i32_0 : i32, i32
  }
  func.func @transform_2(%arg0: i32) -> (i32, i32) {
    %c0_i32 = arith.constant 0 : i32
    %c0_i32_0 = arith.constant 0 : i32
    %c0_i32_1 = arith.constant 0 : i32
    return %c0_i32, %c0_i32_0 : i32, i32
  }
  func.func @transform_3(%arg0: i32) -> (i32, i32) {
    %c0_i32 = arith.constant 0 : i32
    %c0_i32_0 = arith.constant 0 : i32
    %c0_i32_1 = arith.constant 0 : i32
    return %c0_i32, %c0_i32_0 : i32, i32
  }
  func.func @transform_4(%arg0: i32) -> (i32, i32) {
    %c0_i32 = arith.constant 0 : i32
    %c0_i32_0 = arith.constant 0 : i32
    %c0_i32_1 = arith.constant 0 : i32
    return %c0_i32, %c0_i32_0 : i32, i32
  }
}

</mosaic_0001>

<bundles_post_ra>
// kernel: policy_rollout.1
= control target key start
LH: loop header
LB: loop body
LE: loop exit
PB: predicated region body
PF: predicated region fallthrough
CT: control target
= control target key end

     0   :  { %10 = vsyncpa [#allocation4], 0  ;;  %s1354_s0 = inlined_call_operand.vmem [shape: f32[8,128], index: 0, kind: input, shape index: {}]   ;;  %s1355_s1 = inlined_call_operand.hbm [shape: f32[360,128], index: 1, kind: input, shape index: {}]   ;;  %s1356_s2 = inlined_call_operand.vmem [shape: f32[8,128], index: 2, kind: input, shape index: {}]   ;;  %s1357_s3 = inlined_call_operand.hbm [shape: f32[8,128], index: 3, kind: output, shape index: {0}]   ;;  %s1358_s4 = inlined_call_operand.vmem [shape: f32[8,128], index: 4, kind: output, shape index: {1}]  }
   0x1   :  { %11 = vsyncpa [#allocation5], 0  ;;  %s1208_s15 = smov 0  }
   0x2 LB: > { %s1214_s16 = sadd.s32 4294967295, %s1170_s15   ;;  %p820_p0 = scmp.ge.s32.totalorder %s1170_s15, 1  ;;  %s1170_s15 = sphi %s1208_s15, %s17_s15  }
   0x3   : > { %p127_p1 = scmp.lt.s32.totalorder %s1170_s15, 9  ;;  %s1172_s17 = smov [#allocation3]  }
   0x4   : > { %s142_s18 = sshll.u32 %s1172_s17, 4  ;;  %p1359_p4 = scmp.eq.s32.totalorder %s1214_s16, 0  ;;  %s143_s18 = int_to_ptr.vmem [resolvable:$true] %s142_s18 }
   0x5   : > { %p1219_p3 = pnand %p820_p0, %p127_p1  ;;  %s1102_s23 = scalar_lea.hbm %s1355_s1, 5760 }
   0x6   : > { %p1103_p7 = scmp.ne.s32.totalorder %s1355_s1, %s1102_s23  ;;  %p1109_p11 = scmp.lt.u32.totalorder %s1102_s23, %s1355_s1 }
   0x7   : > { %s1361_s19 = scalar_select %p1219_p3, 1, 0 }
   0x8   : > { %p1055_p5 = pneg %p1219_p3 }
   0xa   : > { %p1228_p6 = pnand %p1359_p4, %p1055_p5 }
   0xc   : > { %p1104_p8 = pneg %p1228_p6 }
   0xe   : > { %p1105_p9 = pnand %p1104_p8, %p1103_p7 }
  0x10   : > { %p1106_p10 = pneg %p1105_p9 }
  0x12   : > { %p1111_p12 = pnand %p1109_p11, %p1106_p10 }
  0x14   : > { %1114 = shalt.err (!%p1111_p12)
}
  0x15   : > { %s1115_s28 = scalar_lea.vmem %s143_s18, 5760  ;;  %p1123_p5 = scmp.lt.s32.totalorder %s143_s18, %s143_s18 }
  0x16   : > { %p1116_p13 = scmp.ne.s32.totalorder %s143_s18, %s1115_s28  ;;  %p1124_p2 = scmp.lt.s32.totalorder %s1115_s28, %s1115_s28 }
  0x18   : > { %p1118_p0 = pnand %p1116_p13, %p1104_p8  ;;  %p1125_p4 = por %p1124_p2, %p1123_p5 }
  0x1a   : > { %p1119_p1 = pneg %p1118_p0 }
  0x1c   : > { %p1126_p3 = pnand %p1125_p4, %p1119_p1 }
  0x1e   : > { %1129 = shalt.err (!%p1126_p3)
}
  0x1f   : > { %s1173_s29 = smov 128   ;;  %s1174_s30 = smov 8  }
  0x20   : > { %1058 = dma.hbm_to_vmem [thread:$0]  (!%p1228_p6), %s1355_s1, 5760, %s143_s18, [#allocation4], %s1173_s29, %s1173_s29, %s1174_s30  }
  0x21   : > { %p1363_p7 = scmp.ne.s32.totalorder %s1361_s19, 0 }
  0x22   : > { %p1364_p9 = scmp.eq.s32.totalorder (!%p1363_p7), %s1214_s16, 0 }
  0x23   : > { %161 = sbr.rel (%p1363_p7) target bundleno = 2192 (0x890), region = 32 }
  0x2a   : > { %1161 = dma.done.wait (%p1364_p9), [#allocation4], 5760   ;;  %p1365_p8 = pmov %p1364_p9 }
  0x2b   : > { %p1366_p2 = scmp.ne.s32.totalorder %s1214_s16, 0 }
  0x2c   : > { %1163 = vsyncadd (%p1365_p8), [#allocation4], 4294961536  ;;  %v181_v0 = vld [vmem:[%s1356_s2] sm:$0xff] (!%p1366_p2)  ;;  %v1175_v1 = vmov (!%p1366_p2), 0.0  }
  0x2d   : > { %180 = sbr.rel (%p1366_p2) target bundleno = 52 (0x34), region = 40  ;;  %182 = vst [vmem:[#allocation2] sm:$0xff] (!%p1366_p2), %v181_v0  ;;  %183 = vst [vmem:[#allocation6] sm:$0xff] (!%p1366_p2), %v1175_v1 }
  0x34 PF: > { %v188_v2 = vld [vmem:[#allocation3] sm:$0xff]  ;;  %v189_v3 = vld [vmem:[#allocation3 + $0x8] sm:$0xff]  ;;  %v190_v4 = vld [vmem:[#allocation3 + $0x10] sm:$0xff]  ;;  %v1176_v5 = vmov 0.0|0.0   ;;  %vm1177_vm0 = vmmov 0   ;;  %v1178_v8 = vmov 0.0   ;;  %s185_s11 = scalar_lea.vmem %s1354_s0, %s1214_s16 }
  0x35   : > { %987 = vmatprep.subr.bf16.mxu0 %v1176_v5  ;;  %v988_v6 = vpack.c.bf16 %v189_v3, %v188_v2  ;;  %v191_v7 = vld [vmem:[#allocation3 + $0x18] sm:$0xff]  ;;  %921 = vmatprep.mubr.msk.f32.mxu0 %vm1177_vm0, %v1178_v8  ;;  %v192_v10 = vld [vmem:[#allocation3 + $0x20] sm:$0xff]  ;;  %v193_v11 = vld [vmem:[#allocation3 + $0x28] sm:$0xff]  ;;  %s1179_s12 = smov 64   ;;  %s1180_s13 = smov 32   ;;  %vm313_vm1 = vcmask 261120  }
  0x36   : > { %1011 = vmatprep.subr.bf16.mxu1 %v1176_v5  ;;  %932 = vmatprep.mubr.msk.f32.mxu1 %vm1177_vm0, %v1178_v8  ;;  %v991_v9 = vpack.c.bf16 %v191_v7, %v190_v4  ;;  %v994_v12 = vpack.c.bf16 %v193_v11, %v192_v10  ;;  %v194_v13 = vld [vmem:[#allocation3 + $0x30] sm:$0xff]  ;;  %v195_v14 = vld [vmem:[#allocation3 + $0x38] sm:$0xff]  ;;  %v196_v16 = vld [vmem:[#allocation3 + $0x40] sm:$0xff]  ;;  %vm492_vm2 = vcmask 253952   ;;  %s1181_s14 = smov 96   ;;  %vm600_vm3 = vcmask 523264  }
  0x37   : > { %989 = vmatpush3.bf16.msra.mxu0 %v988_v6  ;;  %v997_v15 = vpack.c.bf16 %v195_v14, %v194_v13  ;;  %v197_v17 = vld [vmem:[#allocation3 + $0x48] sm:$0xff]  ;;  %v198_v19 = vld [vmem:[#allocation3 + $0x50] sm:$0xff]  ;;  %v199_v20 = vld [vmem:[#allocation3 + $0x58] sm:$0xff]  ;;  %s840_s17 = scalar_lea.vmem [#allocation6], %s1170_s15  ;;  %p835_p3 = scmp.ne.s32.totalorder %s1214_s16, 7 }
  0x38   : > { %990 = vmatprep.subr.bf16.mxu0 %v1176_v5  ;;  %v1000_v18 = vpack.c.bf16 %v197_v17, %v196_v16  ;;  %v1003_v21 = vpack.c.bf16 %v199_v20, %v198_v19  ;;  %v200_v22 = vld [vmem:[#allocation3 + $0x60] sm:$0xff]  ;;  %v201_v23 = vld [vmem:[#allocation3 + $0x68] sm:$0xff]  ;;  %v202_v25 = vld [vmem:[#allocation3 + $0x70] sm:$0xff] }
  0x39   : > { %v1006_v24 = vpack.c.bf16 %v201_v23, %v200_v22  ;;  %v203_v26 = vld [vmem:[#allocation3 + $0x78] sm:$0xff]  ;;  %v204_v31 = vld [vmem:[#allocation3 + $0x80] sm:$0x1]  ;;  %v308_v47 = vld [vmem:[#allocation3 + $0xa8] sm:$0xff] }
  0x3a   : > { %v1009_v27 = vpack.c.bf16 %v203_v26, %v202_v25  ;;  %v1275_v28 = vld [vmem:[#allocation2] sm:$0xff]  ;;  %v309_v48 = vld [vmem:[#allocation3 + $0xb0] sm:$0xff]  ;;  %v311_v51 = vld [vmem:[#allocation3 + $0xc0] sm:$0xff] }
  0x3b   : > { %992 = vmatpush3.bf16.msra.mxu0 %v991_v9  ;;  %v186_v29 = vld [vmem:[%s185_s11] sm:$0x1]  ;;  %v283_v36 = vrot.slane %v1275_v28, 2  ;;  %v1012_v50 = vpack.c.bf16 %v309_v48, %v308_v47  ;;  %v304_v53 = vld [vmem:[#allocation3 + $0x88] sm:$0xff]  ;;  %v305_v54 = vld [vmem:[#allocation3 + $0x90] sm:$0xff]  ;;  %v312_v55 = vrot.slane %v1275_v28, 1 }
  0x3c   : > { %993 = vmatprep.subr.bf16.mxu0 %v1176_v5  ;;  %v187_v30 = vadd.f32 %v186_v29, %v1275_v28  ;;  %v310_v49 = vld [vmem:[#allocation3 + $0xb8] sm:$0xff]  ;;  %v1018_v56 = vpack.c.bf16 %v305_v54, %v304_v53  ;;  %v307_v58 = vld [vmem:[#allocation3 + $0xa0] sm:$0xff]  ;;  %v470_v63 = vrot.slane %v1275_v28, 3  ;;  %v461_v4 = vld [vmem:[#allocation3 + $0xc8] sm:$0x1] }
  0x3d   : > { %1013 = vmatpush3.bf16.msra.mxu1 %v1012_v50  ;;  %v1015_v52 = vpack.c.bf16 %v311_v51, %v310_v49  ;;  %v306_v57 = vld [vmem:[#allocation3 + $0x98] sm:$0xff]  ;;  %v511_v23 = vld [vmem:[#allocation3 + $0xe0] sm:$0xff]  ;;  %v512_v25 = vld [vmem:[#allocation3 + $0xe8] sm:$0xff] }
  0x3e   : > { %1014 = vmatprep.subr.bf16.mxu1 %v1176_v5  ;;  %v1021_v60 = vpack.c.bf16 %v307_v58, %v306_v57  ;;  %v510_v22 = vld [vmem:[#allocation3 + $0xd8] sm:$0xff]  ;;  %v1027_v26 = vpack.c.bf16 %v512_v25, %v511_v23  ;;  %v680_v53 = vld [vmem:[#allocation3 + $0x148] sm:$0xff] }
  0x3f   : > { %995 = vmatpush3.bf16.msra.mxu0 %v994_v12  ;;  %v599_v58 = vld [vmem:[#allocation3 + $0x138] sm:$0x1] }
  0x40   : > { %996 = vmatprep.subr.bf16.mxu0 %v1176_v5 }
  0x41   : > { %1016 = vmatpush3.bf16.msra.mxu1 %v1015_v52  ;;  %v679_v52 = vld [vmem:[#allocation3 + $0x140] sm:$0xff] }
  0x42   : > { %1017 = vmatprep.subr.bf16.mxu1 %v1176_v5  ;;  %v1042_v54 = vpack.c.bf16 %v680_v53, %v679_v52 }
  0x43   : > { %998 = vmatpush3.bf16.msra.mxu0 %v997_v15 }
  0x44   : > { %999 = vmatprep.subr.bf16.mxu0 %v1176_v5  ;;  %933 = vmatmul.mubr.msk.f32.vlgmr.msra.gmra.mrb[0].mxu1 %vm313_vm1, %v312_v55  ;;  %v681_v55 = vld [vmem:[#allocation3 + $0x150] sm:$0xff] }
  0x45   : > { %1019 = vmatpush3.bf16.msra.mxu1 %v1018_v56  ;;  %943 = vmatprep.mubr.msk.f32.mxu1 %vm1177_vm0, %v1178_v8  ;;  %v682_v56 = vld [vmem:[#allocation3 + $0x158] sm:$0xff] }
  0x46   : > { %1020 = vmatprep.subr.bf16.mxu1 %v1176_v5  ;;  %v1045_v57 = vpack.c.bf16 %v682_v56, %v681_v55 }
  0x47   : > { %1001 = vmatpush3.bf16.msra.mxu0 %v1000_v18 }
  0x48   : > { %1002 = vmatprep.subr.bf16.mxu0 %v1176_v5 }
  0x49   : > { %1022 = vmatpush3.bf16.msra.mxu1 %v1021_v60 }
  0x4a   : > { %1023 = vmatprep.subr.bf16.mxu1 %v1176_v5 }
  0x4b   : > { %1004 = vmatpush3.bf16.msra.mxu0 %v1003_v21  ;;  %v509_v21 = vld [vmem:[#allocation3 + $0xd0] sm:$0xff] }
  0x4c   : > { %1005 = vmatprep.subr.bf16.mxu0 %v1176_v5 }
  0x4f   : > { %1007 = vmatpush3.bf16.msra.mxu0 %v1006_v24  ;;  %v1024_v24 = vpack.c.bf16 %v510_v22, %v509_v21 }
  0x50   : > { %1008 = vmatprep.subr.bf16.mxu0 %v1176_v5 }
  0x53   : > { %1010 = vmatpush3.bf16.msra.mxu0 %v1009_v27 }
  0x54   : > { %1041 = vmatprep.subr.bf16.mxu0 %v1176_v5 }
  0x56   : > { %922 = vmatmul.mubr.f32.vlgmr.msra.gmra.mrb[0].mxu0 %v187_v30 }
  0x57   : > { %984 = vmatprep.mubr.msk.f32.mxu0 %vm1177_vm0, %v1178_v8  ;;  %1043 = vmatpush3.bf16.msra.mxu0 %v1042_v54 }
  0x58   : > { %1044 = vmatprep.subr.bf16.mxu0 %v1176_v5 }
  0x5b   : > { %1046 = vmatpush3.bf16.msra.mxu0 %v1045_v57 }
 0x117   : > { %v382_v0 = vpop.f32.mrb[0].mxu1 }
 0x118   : > { %v934_v1 = vpop.f32.mrb[1].mxu1 }
 0x129   : > { %v271_v32 = vpop.f32.mrb[0].mxu0 }
 0x12a   : > { %v272_v33 = vadd.f32 %v271_v32, %v204_v31  ;;  %v923_v34 = vpop.f32.mrb[1].mxu0 }
 0x12b   : > { %v592_v34 = vld [vmem:[#allocation3 + $0x100] sm:$0xff] }
 0x12c   : > { %1082 = vtanh.f32 %v272_v33  ;;  %v825_v37 = vmul.f32 -1.442695, %v272_v33  ;;  %v591_v33 = vld [vmem:[#allocation3 + $0xf8] sm:$0xff] }
 0x12e   : > { %1084 = vpow2.f32 %v825_v37  ;;  %v594_v37 = vld [vmem:[#allocation3 + $0x110] sm:$0xff] }
 0x136   : > { %v1083_v35 = vpop.eup %1082 }
 0x137   : > { %289 = vrot.lane.b32.xlu0 %v1083_v35, %s1179_s12  ;;  %v1030_v35 = vpack.c.bf16 %v592_v34, %v591_v33 }
 0x138   : > { %v1085_v38 = vpop.eup %1084 }
 0x139   : > { %v278_v39 = vadd.f32 1.0, %v1085_v38 }
 0x13b   : > { %284 = vrot.lane.b32.xlu0 %v283_v36, %s1180_s13  ;;  %1086 = vrcp.f32 %v278_v39  ;;  %v593_v36 = vld [vmem:[#allocation3 + $0x108] sm:$0xff]  ;;  %v595_v39 = vld [vmem:[#allocation3 + $0x118] sm:$0xff] }
 0x13c   : > { %v1033_v38 = vpack.c.bf16 %v594_v37, %v593_v36 }
 0x145   : > { %v1087_v40 = vpop.eup %1086 }
 0x1a9   : > { %v290_v41 = vpop.permute.xlu0 %289 }
 0x1aa   : > { %v292_v42 = vmul.f32 %v1087_v40, %v290_v41 }
 0x1ac   : > { %294 = vrot.lane.b32.xlu1 %v292_v42, %s1180_s13  ;;  %v598_v42 = vld [vmem:[#allocation3 + $0x130] sm:$0xff] }
 0x1ad   : > { %v285_v43 = vpop.permute.xlu0 %284 }
 0x1ae   : > { %v287_v44 = vmul.f32 %v1087_v40, %v285_v43 }
 0x21e   : > { %v295_v45 = vpop.permute.xlu1 %294 }
 0x21f   : > { %v1286_v46 = vadd.f32 %v295_v45, %v287_v44  ;;  %v513_v44 = vld [vmem:[#allocation3 + $0xf0] sm:$0x1] }
 0x221   : > { %1088 = vtanh.f32 %v1286_v46 }
 0x22b   : > { %v1089_v59 = vpop.eup %1088 }
 0x22c   : > { %300 = vrot.lane.b32.xlu1 %v1089_v59, %s1179_s12 }
 0x29e   : > { %v301_v61 = vpop.permute.xlu1 %300 }
 0x29f   : > { %v303_v62 = vmul.f32 %v1087_v40, %v301_v61  ;;  %v596_v40 = vld [vmem:[#allocation3 + $0x120] sm:$0xff] }
 0x2a0   : > { %v1036_v41 = vpack.c.bf16 %v596_v40, %v595_v39 }
 0x2a1   : > { %387 = vrot.lane.b32.xlu0 %v303_v62, %s1180_s13 }
 0x2a5   : > { %471 = vrot.lane.b32.xlu0 %v470_v63, %s1180_s13 }
 0x313   : > { %v388_v2 = vpop.permute.xlu0 %387 }
 0x314   : > { %493 = vst.msk [vmem:[#allocation2] sm:$0x1] %vm492_vm2, %v388_v2  ;;  %944 = vmatmul.mubr.msk.f32.vlgmr.msra.gmra.mrb[2].mxu1 %vm313_vm1, %v388_v2  ;;  %v683_v2 = vld [vmem:[#allocation3 + $0x160] sm:$0x1] }
 0x315   : > { %954 = vmatprep.mubr.msk.f32.mxu1 %vm1177_vm0, %v1178_v8  ;;  %1025 = vmatpush3.bf16.msra.mxu1 %v1024_v24 }
 0x316   : > { %1026 = vmatprep.subr.bf16.mxu1 %v1176_v5 }
 0x317   : > { %v472_v17 = vpop.permute.xlu0 %471 }
 0x319   : > { %1028 = vmatpush3.bf16.msra.mxu1 %v1027_v26 }
 0x31a   : > { %1029 = vmatprep.subr.bf16.mxu1 %v1176_v5 }
 0x3e7   : > { %v457_v3 = vpop.f32.mrb[2].mxu1 }
 0x3e8   : > { %v458_v6 = vadd.f32 %v457_v3, %v382_v0  ;;  %v945_v7 = vpop.f32.mrb[3].mxu1 }
 0x3ea   : > { %v462_v9 = vadd.f32 %v461_v4, %v458_v6 }
 0x3ec   : > { %1090 = vtanh.f32 %v462_v9  ;;  %v828_v11 = vmul.f32 -1.442695, %v462_v9 }
 0x3ee   : > { %1092 = vpow2.f32 %v828_v11 }
 0x3f6   : > { %v1091_v10 = vpop.eup %1090 }
 0x3f7   : > { %476 = vrot.lane.b32.xlu1 %v1091_v10, %s1179_s12 }
 0x3f8   : > { %v1093_v12 = vpop.eup %1092 }
 0x3f9   : > { %v466_v13 = vadd.f32 1.0, %v1093_v12 }
 0x3fb   : > { %1094 = vrcp.f32 %v466_v13 }
 0x405   : > { %v1095_v14 = vpop.eup %1094 }
 0x406   : > { %v474_v18 = vmul.f32 %v1095_v14, %v472_v17 }
 0x469   : > { %v477_v15 = vpop.permute.xlu1 %476 }
 0x46a   : > { %v479_v16 = vmul.f32 %v1095_v14, %v477_v15 }
 0x46c   : > { %481 = vrot.lane.b32.xlu1 %v479_v16, %s1180_s13 }
 0x4de   : > { %v482_v19 = vpop.permute.xlu1 %481 }
 0x4df   : > { %v484_v20 = vadd.f32 %v482_v19, %v474_v18 }
 0x4e1   : > { %1096 = vtanh.f32 %v484_v20 }
 0x4eb   : > { %v1097_v27 = vpop.eup %1096 }
 0x4ec   : > { %487 = vrot.lane.b32.xlu0 %v1097_v27, %s1179_s12 }
 0x4f0   : > { %500 = vrot.lane.b32.xlu0 %v1286_v46, %s1181_s14 }
 0x55e   : > { %v488_v28 = vpop.permute.xlu0 %487 }
 0x55f   : > { %v490_v29 = vmul.f32 %v1095_v14, %v488_v28 }
 0x561   : > { %495 = vrot.lane.b32.xlu1 %v490_v29, %s1180_s13 }
 0x562   : > { %v501_v30 = vpop.permute.xlu0 %500 }
 0x563   : > { %503 = vst.msk [vmem:[#allocation2 + $0x2] sm:$0x1] %vm492_vm2, %v501_v30 }
 0x565   : > { %505 = vrot.lane.b32.xlu1 %v484_v20, %s1181_s14 }
 0x5d3   : > { %v496_v31 = vpop.permute.xlu1 %495 }
 0x5d4   : > { %498 = vst.msk [vmem:[#allocation2 + $0x1] sm:$0x1] %vm492_vm2, %v496_v31  ;;  %955 = vmatmul.mubr.msk.f32.vlgmr.msra.gmra.mrb[4].mxu1 %vm313_vm1, %v496_v31 }
 0x5d5   : > { %973 = vmatprep.mubr.msk.f32.mxu1 %vm1177_vm0, %v1178_v8  ;;  %1031 = vmatpush3.bf16.msra.mxu1 %v1030_v35  ;;  %v597_v8 = vld [vmem:[#allocation3 + $0x128] sm:$0xff] }
 0x5d6   : > { %1032 = vmatprep.subr.bf16.mxu1 %v1176_v5  ;;  %v1039_v43 = vpack.c.bf16 %v598_v42, %v597_v8 }
 0x5d7   : > { %v506_v32 = vpop.permute.xlu1 %505 }
 0x5d8   : > { %508 = vst.msk [vmem:[#allocation2 + $0x3] sm:$0x1] %vm492_vm2, %v506_v32 }
 0x5d9   : > { %1034 = vmatpush3.bf16.msra.mxu1 %v1033_v38 }
 0x5da   : > { %1035 = vmatprep.subr.bf16.mxu1 %v1176_v5 }
 0x5dd   : > { %1037 = vmatpush3.bf16.msra.mxu1 %v1036_v41 }
 0x5de   : > { %1038 = vmatprep.subr.bf16.mxu1 %v1176_v5 }
 0x5df   : > { %v763_v6 = vld [vmem:[#allocation2] sm:$0xff] (!%p835_p3) }
 0x5e0   : > { %764 = vst [vmem:[%s1358_s4] sm:$0xff] (!%p835_p3), %v763_v6 }
 0x5e1   : > { %1040 = vmatpush3.bf16.msra.mxu1 %v1039_v43 }
 0x6a7   : > { %v582_v45 = vpop.f32.mrb[4].mxu1 }
 0x6a8   : > { %v583_v46 = vadd.f32 %v582_v45, %v513_v44  ;;  %v956_v47 = vpop.f32.mrb[5].mxu1 }
 0x6aa   : > { %v587_v48 = vmul.f32 1.442695, %v583_v46  ;;  %vm586_vm4 = vcmp.gt.f32.partialorder %v583_v46, 0.0 }
 0x6ac   : > { %1098 = vpow2.f32 %v587_v48 }
 0x6b6   : > { %v1099_v49 = vpop.eup %1098 }
 0x6b7   : > { %v830_v50 = vadd.f32 -1.0, %v1099_v49 }
 0x6b9   : > { %v590_v51 = vsel %vm586_vm4, %v583_v46, %v830_v50 }
 0x6ba   : > { %974 = vmatmul.mubr.msk.f32.vlgmr.msra.gmra.mrb[6].mxu1 %vm600_vm3, %v590_v51 }
 0x78d   : > { %v670_v59 = vpop.f32.mrb[6].mxu1 }
 0x78e   : > { %v671_v60 = vadd.f32 %v670_v59, %v599_v58  ;;  %v975_v61 = vpop.f32.mrb[7].mxu1 }
 0x790   : > { %v675_v62 = vmul.f32 1.442695, %v671_v60  ;;  %vm674_vm5 = vcmp.gt.f32.partialorder %v671_v60, 0.0 }
 0x792   : > { %1100 = vpow2.f32 %v675_v62 }
 0x79c   : > { %v1101_v63 = vpop.eup %1100 }
 0x79d   : > { %v832_v0 = vadd.f32 -1.0, %v1101_v63 }
 0x79f   : > { %v678_v1 = vsel %vm674_vm5, %v671_v60, %v832_v0 }
 0x7a0   : > { %985 = vmatmul.mubr.msk.f32.vlgmr.msra.gmra.mrb[2].mxu0 %vm313_vm1, %v678_v1 }
 0x870   : > { %762 = sbr.rel (%p835_p3) target bundleno = 2167 (0x877), region = 44 }
 0x873   : > { %v753_v3 = vpop.f32.mrb[2].mxu0 }
 0x874   : > { %v754_v5 = vadd.f32 %v753_v3, %v683_v2  ;;  %v986_v4 = vpop.f32.mrb[3].mxu0 }
 0x876   : > { %842 = vst [vmem:[%s840_s17 - $0x1] sm:$0x1] %v754_v5 }
 0x877 PF: > { %p1061_p4 = scmp.eq.s32.totalorder %s1214_s16, 7  ;;  %s1182_s20 = smov [#allocation6]  }
 0x878   : > { %s772_s21 = sshll.u32 %s1182_s20, 4  ;;  %s773_s21 = int_to_ptr.vmem [resolvable:$true] %s772_s21 }
 0x879   : > { %s1130_s22 = scalar_lea.vmem %s773_s21, 128  ;;  %p1137_p12 = scmp.lt.s32.totalorder %s773_s21, %s773_s21 }
 0x87a   : > { %p1131_p6 = scmp.ne.s32.totalorder %s773_s21, %s1130_s22  ;;  %p1138_p13 = scmp.lt.s32.totalorder %s1130_s22, %s1130_s22 }
 0x87c   : > { %p1132_p10 = pnand %p1131_p6, %p1061_p4  ;;  %p1139_p0 = por %p1138_p13, %p1137_p12 }
 0x87e   : > { %p1133_p11 = pneg %p1132_p10 }
 0x880   : > { %p1140_p1 = pnand %p1139_p0, %p1133_p11 }
 0x882   : > { %1143 = shalt.err (!%p1140_p1)
}
 0x883   : > { %s1144_s25 = scalar_lea.hbm %s1357_s3, 128 }
 0x884   : > { %p1145_p5 = scmp.ne.s32.totalorder %s1357_s3, %s1144_s25  ;;  %p1150_p8 = scmp.lt.u32.totalorder %s1144_s25, %s1357_s3 }
 0x886   : > { %p1146_p7 = pnand %p1145_p5, %p1061_p4 }
 0x888   : > { %p1147_p9 = pneg %p1146_p7 }
 0x88a   : > { %p1152_p2 = pnand %p1150_p8, %p1147_p9 }
 0x88c   : > { %1155 = shalt.err (!%p1152_p2)
}
 0x88d   : > { %1052 = dma.vmem_to_hbm [thread:$0]  (%p1061_p4), %s773_s21, 128, %s1357_s3, [#allocation5]  }
 0x88e   : > { %1165 = dma.done.wait (%p1061_p4), [#allocation5], 128  }
 0x88f   : > { %1167 = vsyncadd (%p1061_p4), [#allocation5], 4294967168 }
 0x890 PF: > { %s17_s15 = sadd.s32 1, %s1170_s15  }
 0x891   : > { %p14_p3 = scmp.ge.s32.totalorder %s17_s15, 10  }
 0x893   :  { %16 = sbr.rel (!%p14_p3) target bundleno = 2 (0x2), region = 79 }
 0x89a   :  { %791 = vsyncpa [#allocation4], 1 }
 0x89b   :  { %793 = vsyncpa [#allocation4 + $0x1], 1 }
 0x89c   :  { %794 = vsyncpa [#allocation5], 1 }
 0x89d   :  { %796 = vsyncpa [#allocation5 + $0x1], 1 }

</bundles_post_ra>
